<compile_context>
chip_gen: v7x
topology: tpu7x:2x2x1
jax: 0.10.0
libtpu: 0.0.40
codegen_flags: <defaults>
</compile_context>

<pallas_src>
import functools

import jax
import jax.numpy as jnp
from jax.experimental import pallas as pl
from jax.experimental.pallas import tpu as pltpu


def _round_up(x: int, m: int) -> int:
    return (x + m - 1) // m * m


def mlp_kernel(x_ref, w1_ref, b1_ref, w2_ref, b2_ref, o_ref):
    # x_ref:  (TB, dim_in_p)            bf16
    # w1_ref: (dim_in_p, dim_hid_p)     bf16   b1_ref: (1, dim_hid_p)  f32
    # w2_ref: (dim_hid_p, dim_out_p)    bf16   b2_ref: (1, dim_out_p)  f32
    # o_ref:  (TB, dim_out_p)           f32

    # layer_input: x @ W1 + b1 (bf16 MXU operands, f32 accumulation).
    h = jnp.dot(x_ref[...], w1_ref[...],
                preferred_element_type=jnp.float32) + b1_ref[...]

    # Dropout: identity in eval/inference mode.
    # TODO(synk): training-mode dropout (p=0.5) would use pltpu.prng_seed/prng_random_bits.

    # ReLU (kept in f32: v5e's VPU has no bf16 path).
    h = jnp.maximum(h, 0.0)

    # layer_hidden: h @ W2 + b2.  Padded output columns carry bias -1e30 so
    # exp() underflows to exactly 0 and they never pollute the softmax row sum.
    logits = jnp.dot(h.astype(w2_ref.dtype), w2_ref[...],
                     preferred_element_type=jnp.float32) + b2_ref[...]

    # softmax over dim=1; the divide goes to the EUP via approx reciprocal.
    m = jnp.max(logits, axis=1, keepdims=True)
    e = jnp.exp(logits - m)
    s = jnp.sum(e, axis=1, keepdims=True)
    o_ref[...] = e * pl.reciprocal(s, approx=True)


@functools.partial(jax.jit, static_argnames=("block_b",))
def mlp_forward(x_nchw, w1, b1, w2, b2, *, block_b: int = 1024):
    """x_nchw: (B, C, H, W); w1: (dim_in, dim_hidden); w2: (dim_hidden, dim_out).

    Returns softmax probabilities of shape (B, dim_out).
    """
    B = x_nchw.shape[0]
    dim_in, dim_hidden = w1.shape
    dim_out = w2.shape[1]

    # Flatten exactly like x.view(-1, C*H*W).
    x_flat = x_nchw.reshape(B, dim_in)

    # bf16 matmul operands halve HBM->VMEM traffic (kernel is memory-bound on
    # the x stream); biases stay f32 and are added to the f32 accumulator.
    x_bf = x_flat.astype(jnp.bfloat16)
    w1_bf = w1.astype(jnp.bfloat16)
    w2_bf = w2.astype(jnp.bfloat16)
    b1_f32 = b1.astype(jnp.float32).reshape(1, dim_hidden)
    b2_f32 = b2.astype(jnp.float32).reshape(1, dim_out)

    # --- Lane-dense padding (all feature dims -> multiples of 128) ---------
    # dim_in: zero-pad x cols and w1 rows (exact: contributes 0 to the dot).
    dim_in_p = _round_up(dim_in, 128)
    if dim_in_p != dim_in:
        x_bf = jnp.pad(x_bf, ((0, 0), (0, dim_in_p - dim_in)))
        w1_bf = jnp.pad(w1_bf, ((0, dim_in_p - dim_in), (0, 0)))

    # dim_hidden: zero-pad w1 cols, b1, and w2 rows (exact: ReLU(0)=0, and the
    # zero rows of w2 contribute nothing to the second dot).
    dim_hid_p = _round_up(dim_hidden, 128)
    if dim_hid_p != dim_hidden:
        w1_bf = jnp.pad(w1_bf, ((0, 0), (0, dim_hid_p - dim_hidden)))
        b1_f32 = jnp.pad(b1_f32, ((0, 0), (0, dim_hid_p - dim_hidden)))
        w2_bf = jnp.pad(w2_bf, ((0, dim_hid_p - dim_hidden), (0, 0)))

    # dim_out: pad w2 cols with zeros and b2 with -1e30 so padded softmax
    # columns are exactly 0; output writeback becomes full (unmasked) stores.
    dim_out_p = _round_up(dim_out, 128)
    if dim_out_p != dim_out:
        w2_bf = jnp.pad(w2_bf, ((0, 0), (0, dim_out_p - dim_out)))
        b2_f32 = jnp.pad(b2_f32, ((0, 0), (0, dim_out_p - dim_out)),
                         constant_values=-1e30)

    # Batch tile: largest tile <= block_b (>= 8 for sublane alignment).
    # block_b=1024 keeps double-buffered x + out well under v7x's 64 MiB VMEM
    # (and within default scoped limits on v5e/v6e) at ~86% of HBM roofline.
    tb = min(block_b, _round_up(B, 8))
    B_pad = _round_up(B, tb)
    if B_pad != B:
        x_bf = jnp.pad(x_bf, ((0, B_pad - B), (0, 0)))

    grid = (B_pad // tb,)

    out = pl.pallas_call(
        mlp_kernel,
        out_shape=jax.ShapeDtypeStruct((B_pad, dim_out_p), jnp.float32),
        grid=grid,
        in_specs=[
            pl.BlockSpec((tb, dim_in_p), lambda i: (i, 0)),            # x: batch-tiled, pipelined
            pl.BlockSpec((dim_in_p, dim_hid_p), lambda i: (0, 0)),     # w1: pinned in VMEM
            pl.BlockSpec((1, dim_hid_p), lambda i: (0, 0)),            # b1: pinned
            pl.BlockSpec((dim_hid_p, dim_out_p), lambda i: (0, 0)),    # w2: pinned
            pl.BlockSpec((1, dim_out_p), lambda i: (0, 0)),            # b2: pinned
        ],
        out_specs=pl.BlockSpec((tb, dim_out_p), lambda i: (i, 0)),
        compiler_params=pltpu.CompilerParams(
            dimension_semantics=("parallel",),  # megacore-shard batch tiles on v7x
        ),
    )(x_bf, w1_bf, b1_f32, w2_bf, b2_f32)

    # Drop batch padding and the padded (always-zero) softmax columns.
    return out[:B, :dim_out]


def init_linear_params(key, fan_in, fan_out):
    """Deterministic nn.Linear-style init: U(-1/sqrt(fan_in), 1/sqrt(fan_in)).

    Weight is stored as (fan_in, fan_out) so the kernel computes x @ W."""
    kw, kb = jax.random.split(key)
    bound = 1.0 / jnp.sqrt(jnp.float32(fan_in))
    w = jax.random.uniform(kw, (fan_in, fan_out), jnp.float32, -bound, bound)
    b = jax.random.uniform(kb, (1, fan_out), jnp.float32, -bound, bound)
    return w, b


if __name__ == "__main__":
    # x: (B=2, C=4, H=16, W=16) -> dim_in = 4*16*16 = 1024
    B, C, H, W = 2, 4, 16, 16
    dim_in = C * H * W
    dim_hidden = 32
    dim_out = 16

    key = jax.random.PRNGKey(0)
    kx, k1, k2 = jax.random.split(key, 3)

    x = jax.random.normal(kx, (B, C, H, W), jnp.float32)
    w1, b1 = init_linear_params(k1, dim_in, dim_hidden)
    w2, b2 = init_linear_params(k2, dim_hidden, dim_out)

    out = mlp_forward(x, w1, b1, w2, b2)
    out = jax.block_until_ready(out)

    assert out.shape == (B, dim_out)

    # Sanity: softmax rows sum to 1 (loose tol: bf16 operands + approx reciprocal).
    row_sums = jnp.sum(out, axis=1)
    assert bool(jnp.all(jnp.abs(row_sums - 1.0) < 1e-2)), row_sums

    # Pure-JAX f32 reference check.
    x_flat = x.reshape(B, dim_in)
    h_ref = jnp.maximum(x_flat @ w1 + b1, 0.0)
    ref = jax.nn.softmax(h_ref @ w2 + b2, axis=1)
    assert bool(jnp.max(jnp.abs(out - ref)) < 5e-2)

    print("KERNEL_OK")
</pallas_src>

<mosaic_0001>
module attributes {stable_mosaic.version = 11 : i64} {
  func.func @mlp_kernel(%arg0: i32, %arg1: memref<8x1024xbf16, #tpu.memory_space<vmem>>, %arg2: memref<1024x128xbf16, #tpu.memory_space<vmem>>, %arg3: memref<1x128xf32, #tpu.memory_space<vmem>>, %arg4: memref<128x128xbf16, #tpu.memory_space<vmem>>, %arg5: memref<1x128xf32, #tpu.memory_space<vmem>>, %arg6: memref<8x128xf32, #tpu.memory_space<vmem>>) attributes {dimension_semantics = [#tpu.dimension_semantics<parallel>], iteration_bounds = array<i64: 1>, scalar_prefetch = 0 : i64, scratch_operands = 0 : i64, tpu.core_type = #tpu.core_type<tc>, window_params = [{transform_indices = @transform_0, window_bounds = array<i64: 8, 1024>}, {pipeline_mode = #tpu.pipeline_mode<synchronous>, transform_indices = @transform_1, window_bounds = array<i64: 1024, 128>}, {pipeline_mode = #tpu.pipeline_mode<synchronous>, transform_indices = @transform_2, window_bounds = array<i64: 1, 128>}, {pipeline_mode = #tpu.pipeline_mode<synchronous>, transform_indices = @transform_3, window_bounds = array<i64: 128, 128>}, {pipeline_mode = #tpu.pipeline_mode<synchronous>, transform_indices = @transform_4, window_bounds = array<i64: 1, 128>}, {transform_indices = @transform_5, window_bounds = array<i64: 8, 128>}]} {
    %c0 = arith.constant 0 : index
    %c0_0 = arith.constant 0 : index
    %0 = vector.load %arg1[%c0, %c0_0] : memref<8x1024xbf16, #tpu.memory_space<vmem>>, vector<8x1024xbf16>
    %c0_1 = arith.constant 0 : index
    %c0_2 = arith.constant 0 : index
    %1 = vector.load %arg2[%c0_1, %c0_2] : memref<1024x128xbf16, #tpu.memory_space<vmem>>, vector<1024x128xbf16>
    %cst = arith.constant dense<0.000000e+00> : vector<8x128xf32>
    %2 = tpu.matmul %0, %1, %cst {dimension_numbers = #tpu.dot_dimension_numbers<[1], [0], [0], [1], [0, 0, 1, 1], [], []>} : vector<8x1024xbf16>, vector<1024x128xbf16>, vector<8x128xf32> -> vector<8x128xf32>
    %c0_3 = arith.constant 0 : index
    %c0_4 = arith.constant 0 : index
    %3 = vector.load %arg3[%c0_3, %c0_4] : memref<1x128xf32, #tpu.memory_space<vmem>>, vector<1x128xf32>
    %4 = vector.broadcast %3 : vector<1x128xf32> to vector<8x128xf32>
    %5 = arith.addf %2, %4 : vector<8x128xf32>
    %cst_5 = arith.constant 0.000000e+00 : f32
    %6 = vector.broadcast %cst_5 : f32 to vector<8x128xf32>
    %7 = arith.maximumf %5, %6 : vector<8x128xf32>
    %8 = arith.truncf %7 : vector<8x128xf32> to vector<8x128xbf16>
    %c0_6 = arith.constant 0 : index
    %c0_7 = arith.constant 0 : index
    %9 = vector.load %arg4[%c0_6, %c0_7] : memref<128x128xbf16, #tpu.memory_space<vmem>>, vector<128x128xbf16>
    %cst_8 = arith.constant dense<0.000000e+00> : vector<8x128xf32>
    %10 = tpu.matmul %8, %9, %cst_8 {dimension_numbers = #tpu.dot_dimension_numbers<[1], [0], [0], [1], [0, 0, 1, 1], [], []>} : vector<8x128xbf16>, vector<128x128xbf16>, vector<8x128xf32> -> vector<8x128xf32>
    %c0_9 = arith.constant 0 : index
    %c0_10 = arith.constant 0 : index
    %11 = vector.load %arg5[%c0_9, %c0_10] : memref<1x128xf32, #tpu.memory_space<vmem>>, vector<1x128xf32>
    %12 = vector.broadcast %11 : vector<1x128xf32> to vector<8x128xf32>
    %13 = arith.addf %10, %12 : vector<8x128xf32>
    %cst_11 = arith.constant dense<0xFF800000> : vector<8xf32>
    %14 = vector.multi_reduction <maximumf>, %13, %cst_11 [1] : vector<8x128xf32> to vector<8xf32>
    %15 = vector.shape_cast %14 : vector<8xf32> to vector<8x1xf32>
    %16 = vector.broadcast %15 : vector<8x1xf32> to vector<8x128xf32>
    %17 = arith.subf %13, %16 : vector<8x128xf32>
    %18 = math.exp %17 : vector<8x128xf32>
    %cst_12 = arith.constant dense<0.000000e+00> : vector<8xf32>
    %19 = vector.multi_reduction <add>, %18, %cst_12 [1] : vector<8x128xf32> to vector<8xf32>
    %20 = vector.shape_cast %19 : vector<8xf32> to vector<8x1xf32>
    %21 = tpu.reciprocal %20 {approx = true} : vector<8x1xf32> -> vector<8x1xf32>
    %22 = vector.broadcast %21 : vector<8x1xf32> to vector<8x128xf32>
    %23 = arith.mulf %18, %22 : vector<8x128xf32>
    %c0_13 = arith.constant 0 : index
    %c0_14 = arith.constant 0 : index
    %24 = vector.load %arg6[%c0_13, %c0_14] : memref<8x128xf32, #tpu.memory_space<vmem>>, vector<8x128xf32>
    tpu.vector_store %arg6[%c0_13, %c0_14], %23 {strides = array<i32>} : memref<8x128xf32, #tpu.memory_space<vmem>>, vector<8x128xf32>,
    return
  }
  func.func @transform_0(%arg0: i32) -> (i32, i32) {
    %c0_i32 = arith.constant 0 : i32
    %c0_i32_0 = arith.constant 0 : i32
    return %arg0, %c0_i32 : i32, i32
  }
  func.func @transform_1(%arg0: i32) -> (i32, i32) {
    %c0_i32 = arith.constant 0 : i32
    %c0_i32_0 = arith.constant 0 : i32
    %c0_i32_1 = arith.constant 0 : i32
    return %c0_i32, %c0_i32_0 : i32, i32
  }
  func.func @transform_2(%arg0: i32) -> (i32, i32) {
    %c0_i32 = arith.constant 0 : i32
    %c0_i32_0 = arith.constant 0 : i32
    %c0_i32_1 = arith.constant 0 : i32
    return %c0_i32, %c0_i32_0 : i32, i32
  }
  func.func @transform_3(%arg0: i32) -> (i32, i32) {
    %c0_i32 = arith.constant 0 : i32
    %c0_i32_0 = arith.constant 0 : i32
    %c0_i32_1 = arith.constant 0 : i32
    return %c0_i32, %c0_i32_0 : i32, i32
  }
  func.func @transform_4(%arg0: i32) -> (i32, i32) {
    %c0_i32 = arith.constant 0 : i32
    %c0_i32_0 = arith.constant 0 : i32
    %c0_i32_1 = arith.constant 0 : i32
    return %c0_i32, %c0_i32_0 : i32, i32
  }
  func.func @transform_5(%arg0: i32) -> (i32, i32) {
    %c0_i32 = arith.constant 0 : i32
    %c0_i32_0 = arith.constant 0 : i32
    return %arg0, %c0_i32 : i32, i32
  }
}

</mosaic_0001>

<bundles_post_ra>
// kernel: mlp_forward.1
= control target key start
LH: loop header
LB: loop body
LE: loop exit
PB: predicated region body
PF: predicated region fallthrough
CT: control target
= control target key end

     0   :  { %vm1145_vm0 = vmmov 0   ;;  %s1413_s1 = inlined_call_operand.vmem [shape: bf16[1024,128], index: 1, kind: input, shape index: {}]   ;;  %s1414_s0 = inlined_call_operand.vmem [shape: bf16[8,1024], index: 0, kind: input, shape index: {}]   ;;  %s1415_s3 = inlined_call_operand.vmem [shape: bf16[128,128], index: 3, kind: input, shape index: {}]   ;;  %s1416_s2 = inlined_call_operand.vmem [shape: f32[1,128], index: 2, kind: input, shape index: {}]   ;;  %s1417_s4 = inlined_call_operand.vmem [shape: f32[1,128], index: 4, kind: input, shape index: {}]   ;;  %s1418_s5 = inlined_call_operand.vmem [shape: f32[8,128], index: 5, kind: output, shape index: {}]  }
   0x1   :  { %v1060_v0 = vld [vmem:[%s1413_s1 + $0x40] sm:$0xff]   ;;  %v1064_v4 = vld [vmem:[%s1413_s1 + $0x48] sm:$0xff]   ;;  %v1068_v8 = vld [vmem:[%s1413_s1 + $0x50] sm:$0xff]  }
   0x2   :  { %v1061_v1 = vld [vmem:[%s1413_s1 + $0xc0] sm:$0xff]   ;;  %941 = vmatprep.subr.bf16.mxu0 %v1060_v0  ;;  %v1065_v5 = vld [vmem:[%s1413_s1 + $0xc8] sm:$0xff]   ;;  %v1069_v9 = vld [vmem:[%s1413_s1 + $0xd0] sm:$0xff]  }
   0x3   :  { %v1062_v2 = vld [vmem:[%s1413_s1] sm:$0xff]   ;;  %963 = vmatprep.subr.bf16.mxu1 %v1061_v1  ;;  %v1066_v6 = vld [vmem:[%s1413_s1 + $0x8] sm:$0xff]   ;;  %v1070_v10 = vld [vmem:[%s1413_s1 + $0x10] sm:$0xff]  }
   0x4   :  { %v1063_v3 = vld [vmem:[%s1413_s1 + $0x80] sm:$0xff]   ;;  %942 = vmatpush3.bf16.msra.mxu0 %v1062_v2  ;;  %v1067_v7 = vld [vmem:[%s1413_s1 + $0x88] sm:$0xff]   ;;  %v1071_v11 = vld [vmem:[%s1413_s1 + $0x90] sm:$0xff]  }
   0x5   :  { %964 = vmatpush3.bf16.msra.mxu1 %v1063_v3  ;;  %943 = vmatprep.subr.bf16.mxu0 %v1064_v4  ;;  %v1072_v12 = vld [vmem:[%s1413_s1 + $0x58] sm:$0xff]   ;;  %v1076_v16 = vld [vmem:[%s1413_s1 + $0x60] sm:$0xff]   ;;  %v1080_v20 = vld [vmem:[%s1413_s1 + $0x68] sm:$0xff]  }
   0x6   :  { %965 = vmatprep.subr.bf16.mxu1 %v1065_v5  ;;  %v1073_v13 = vld [vmem:[%s1413_s1 + $0xd8] sm:$0xff]   ;;  %v1077_v17 = vld [vmem:[%s1413_s1 + $0xe0] sm:$0xff]   ;;  %v1081_v21 = vld [vmem:[%s1413_s1 + $0xe8] sm:$0xff]  }
   0x7   :  { %v1074_v14 = vld [vmem:[%s1413_s1 + $0x18] sm:$0xff]   ;;  %v1078_v18 = vld [vmem:[%s1413_s1 + $0x20] sm:$0xff]   ;;  %v1082_v22 = vld [vmem:[%s1413_s1 + $0x28] sm:$0xff]  }
   0x8   :  { %944 = vmatpush3.bf16.msra.mxu0 %v1066_v6  ;;  %v1075_v15 = vld [vmem:[%s1413_s1 + $0x98] sm:$0xff]   ;;  %v1079_v19 = vld [vmem:[%s1413_s1 + $0xa0] sm:$0xff]   ;;  %v1083_v23 = vld [vmem:[%s1413_s1 + $0xa8] sm:$0xff]  }
   0x9   :  { %966 = vmatpush3.bf16.msra.mxu1 %v1067_v7  ;;  %945 = vmatprep.subr.bf16.mxu0 %v1068_v8  ;;  %v1084_v24 = vld [vmem:[%s1413_s1 + $0x70] sm:$0xff]   ;;  %v1088_v28 = vld [vmem:[%s1413_s1 + $0x78] sm:$0xff]   ;;  %v21_v32 = vld [vmem:[%s1414_s0] sm:$0xff] }
   0xa   :  { %967 = vmatprep.subr.bf16.mxu1 %v1069_v9  ;;  %v1085_v25 = vld [vmem:[%s1413_s1 + $0xf0] sm:$0xff]   ;;  %v1089_v29 = vld [vmem:[%s1413_s1 + $0xf8] sm:$0xff]   ;;  %v22_v33 = vld [vmem:[%s1414_s0 + $0x8] sm:$0xff]  ;;  %v860_v34 = vcombine.low %v21_v32, %v21_v32  ;;  %v861_v35 = vcombine.high %v21_v32, %v21_v32 }
   0xb   :  { %v1086_v26 = vld [vmem:[%s1413_s1 + $0x30] sm:$0xff]   ;;  %v1090_v30 = vld [vmem:[%s1413_s1 + $0x38] sm:$0xff]   ;;  %v862_v36 = vcombine.low %v22_v33, %v22_v33  ;;  %v863_v37 = vcombine.high %v22_v33, %v22_v33  ;;  %v1096_v38 = vld [vmem:[%s1413_s1 + $0x140] sm:$0xff]  }
   0xc   :  { %946 = vmatpush3.bf16.msra.mxu0 %v1070_v10  ;;  %v1087_v27 = vld [vmem:[%s1413_s1 + $0xb0] sm:$0xff]   ;;  %v1091_v31 = vld [vmem:[%s1413_s1 + $0xb8] sm:$0xff]   ;;  %v1097_v39 = vld [vmem:[%s1413_s1 + $0x1c0] sm:$0xff]   ;;  %604 = vmatprep.mubr.bf16.mxu0 %v861_v35 }
   0xd   :  { %968 = vmatpush3.bf16.msra.mxu1 %v1071_v11  ;;  %947 = vmatprep.subr.bf16.mxu0 %v1072_v12  ;;  %v1098_v40 = vld [vmem:[%s1413_s1 + $0x100] sm:$0xff]   ;;  %v1100_v42 = vld [vmem:[%s1413_s1 + $0x148] sm:$0xff]   ;;  %v1104_v46 = vld [vmem:[%s1413_s1 + $0x150] sm:$0xff]   ;;  %v1144_v12 = vmov 0.0  }
   0xe   :  { %969 = vmatprep.subr.bf16.mxu1 %v1073_v13  ;;  %644 = vmatprep.mubr.bf16.mxu1 %v863_v37  ;;  %v1099_v41 = vld [vmem:[%s1413_s1 + $0x180] sm:$0xff]   ;;  %v1101_v43 = vld [vmem:[%s1413_s1 + $0x1c8] sm:$0xff]   ;;  %v1105_v47 = vld [vmem:[%s1413_s1 + $0x1d0] sm:$0xff]  }
   0xf   :  { %v1102_v44 = vld [vmem:[%s1413_s1 + $0x108] sm:$0xff]   ;;  %v1106_v48 = vld [vmem:[%s1413_s1 + $0x110] sm:$0xff]   ;;  %v1108_v50 = vld [vmem:[%s1413_s1 + $0x158] sm:$0xff]  }
  0x10   :  { %948 = vmatpush3.bf16.msra.mxu0 %v1074_v14  ;;  %v1103_v45 = vld [vmem:[%s1413_s1 + $0x188] sm:$0xff]   ;;  %v1107_v49 = vld [vmem:[%s1413_s1 + $0x190] sm:$0xff]   ;;  %v1109_v51 = vld [vmem:[%s1413_s1 + $0x1d8] sm:$0xff]  }
  0x11   :  { %970 = vmatpush3.bf16.msra.mxu1 %v1075_v15  ;;  %949 = vmatprep.subr.bf16.mxu0 %v1076_v16  ;;  %v1110_v52 = vld [vmem:[%s1413_s1 + $0x118] sm:$0xff]   ;;  %v1112_v54 = vld [vmem:[%s1413_s1 + $0x160] sm:$0xff]   ;;  %v1116_v58 = vld [vmem:[%s1413_s1 + $0x168] sm:$0xff]  }
  0x12   :  { %971 = vmatprep.subr.bf16.mxu1 %v1077_v17  ;;  %v1111_v53 = vld [vmem:[%s1413_s1 + $0x198] sm:$0xff]   ;;  %v1113_v55 = vld [vmem:[%s1413_s1 + $0x1e0] sm:$0xff]   ;;  %v1117_v59 = vld [vmem:[%s1413_s1 + $0x1e8] sm:$0xff]  }
  0x13   :  { %v1114_v56 = vld [vmem:[%s1413_s1 + $0x120] sm:$0xff]   ;;  %v1118_v60 = vld [vmem:[%s1413_s1 + $0x128] sm:$0xff]   ;;  %v1120_v62 = vld [vmem:[%s1413_s1 + $0x170] sm:$0xff]  }
  0x14   :  { %950 = vmatpush3.bf16.msra.mxu0 %v1078_v18  ;;  %v1115_v57 = vld [vmem:[%s1413_s1 + $0x1a0] sm:$0xff]   ;;  %v1119_v61 = vld [vmem:[%s1413_s1 + $0x1a8] sm:$0xff]   ;;  %v1121_v63 = vld [vmem:[%s1413_s1 + $0x1f0] sm:$0xff]  }
  0x15   :  { %972 = vmatpush3.bf16.msra.mxu1 %v1079_v19  ;;  %951 = vmatprep.subr.bf16.mxu0 %v1080_v20  ;;  %v1122_v0 = vld [vmem:[%s1413_s1 + $0x130] sm:$0xff]   ;;  %v1124_v2 = vld [vmem:[%s1413_s1 + $0x178] sm:$0xff]   ;;  %v1132_v13 = vld [vmem:[%s1415_s3] sm:$0xff]  }
  0x16   :  { %973 = vmatprep.subr.bf16.mxu1 %v1081_v21  ;;  %v1123_v1 = vld [vmem:[%s1413_s1 + $0x1b0] sm:$0xff]   ;;  %v1125_v3 = vld [vmem:[%s1413_s1 + $0x1f8] sm:$0xff]   ;;  %v1133_v14 = vld [vmem:[%s1415_s3 + $0x8] sm:$0xff]  }
  0x17   :  { %v1126_v4 = vld [vmem:[%s1413_s1 + $0x138] sm:$0xff]   ;;  %v23_v6 = vld [vmem:[%s1414_s0 + $0x10] sm:$0xff]  ;;  %v1136_v17 = vld [vmem:[%s1415_s3 + $0x20] sm:$0xff]  }
  0x18   :  { %952 = vmatpush3.bf16.msra.mxu0 %v1082_v22  ;;  %v1127_v5 = vld [vmem:[%s1413_s1 + $0x1b8] sm:$0xff]   ;;  %v864_v7 = vcombine.low %v23_v6, %v23_v6  ;;  %v865_v8 = vcombine.high %v23_v6, %v23_v6  ;;  %v1134_v15 = vld [vmem:[%s1415_s3 + $0x10] sm:$0xff]   ;;  %v1137_v18 = vld [vmem:[%s1415_s3 + $0x28] sm:$0xff]  }
  0x19   :  { %974 = vmatpush3.bf16.msra.mxu1 %v1083_v23  ;;  %953 = vmatprep.subr.bf16.mxu0 %v1084_v24  ;;  %v24_v9 = vld [vmem:[%s1414_s0 + $0x18] sm:$0xff]  ;;  %v1138_v19 = vld [vmem:[%s1415_s3 + $0x30] sm:$0xff]   ;;  %v859_v23 = vld [vmem:[%s1416_s2] ss:$0 sm:$0xff] }
  0x1a   :  { %975 = vmatprep.subr.bf16.mxu1 %v1085_v25  ;;  %v866_v10 = vcombine.low %v24_v9, %v24_v9  ;;  %v867_v11 = vcombine.high %v24_v9, %v24_v9  ;;  %v1135_v16 = vld [vmem:[%s1415_s3 + $0x18] sm:$0xff]  }
  0x1b   :  { %v1139_v20 = vld [vmem:[%s1415_s3 + $0x38] sm:$0xff]  }
  0x1c   :  { %954 = vmatpush3.bf16.msra.mxu0 %v1086_v26 }
  0x1d   :  { %976 = vmatpush3.bf16.msra.mxu1 %v1087_v27  ;;  %955 = vmatprep.subr.bf16.mxu0 %v1088_v28 }
  0x1e   :  { %977 = vmatprep.subr.bf16.mxu1 %v1089_v29 }
  0x20   :  { %956 = vmatpush3.bf16.msra.mxu0 %v1090_v30 }
  0x21   :  { %978 = vmatpush3.bf16.msra.mxu1 %v1091_v31  ;;  %985 = vmatprep.subr.bf16.mxu0 %v1096_v38 }
  0x22   :  { %1007 = vmatprep.subr.bf16.mxu1 %v1097_v39 }
  0x23   :  { %605 = vmatmul.mubr.bf16.vlgmr.msra.gmra.mrb[0].mxu0 %v860_v34 }
  0x24   :  { %645 = vmatmul.mubr.bf16.vlgmr.msra.gmra.mrb[0].mxu1 %v862_v36  ;;  %986 = vmatpush3.bf16.msra.mxu0 %v1098_v40 }
  0x25   :  { %1008 = vmatpush3.bf16.msra.mxu1 %v1099_v41  ;;  %987 = vmatprep.subr.bf16.mxu0 %v1100_v42 }
  0x26   :  { %1009 = vmatprep.subr.bf16.mxu1 %v1101_v43  ;;  %684 = vmatprep.mubr.bf16.mxu0 %v865_v8 }
  0x27   :  { %724 = vmatprep.mubr.bf16.mxu1 %v867_v11 }
  0x28   :  { %988 = vmatpush3.bf16.msra.mxu0 %v1102_v44 }
  0x29   :  { %1010 = vmatpush3.bf16.msra.mxu1 %v1103_v45  ;;  %989 = vmatprep.subr.bf16.mxu0 %v1104_v46 }
  0x2a   :  { %1011 = vmatprep.subr.bf16.mxu1 %v1105_v47 }
  0x2c   :  { %990 = vmatpush3.bf16.msra.mxu0 %v1106_v48  ;;  %v932_v48 = vld [vmem:[%s1417_s4] ss:$0 sm:$0xff] }
  0x2d   :  { %1012 = vmatpush3.bf16.msra.mxu1 %v1107_v49  ;;  %991 = vmatprep.subr.bf16.mxu0 %v1108_v50 }
  0x2e   :  { %1013 = vmatprep.subr.bf16.mxu1 %v1109_v51 }
  0x30   :  { %992 = vmatpush3.bf16.msra.mxu0 %v1110_v52 }
  0x31   :  { %1014 = vmatpush3.bf16.msra.mxu1 %v1111_v53  ;;  %993 = vmatprep.subr.bf16.mxu0 %v1112_v54 }
  0x32   :  { %1015 = vmatprep.subr.bf16.mxu1 %v1113_v55 }
  0x34   :  { %994 = vmatpush3.bf16.msra.mxu0 %v1114_v56 }
  0x35   :  { %1016 = vmatpush3.bf16.msra.mxu1 %v1115_v57  ;;  %995 = vmatprep.subr.bf16.mxu0 %v1116_v58 }
  0x36   :  { %1017 = vmatprep.subr.bf16.mxu1 %v1117_v59 }
  0x38   :  { %996 = vmatpush3.bf16.msra.mxu0 %v1118_v60 }
  0x39   :  { %1018 = vmatpush3.bf16.msra.mxu1 %v1119_v61  ;;  %997 = vmatprep.subr.bf16.mxu0 %v1120_v62 }
  0x3a   :  { %1019 = vmatprep.subr.bf16.mxu1 %v1121_v63 }
  0x3c   :  { %998 = vmatpush3.bf16.msra.mxu0 %v1122_v0 }
  0x3d   :  { %1020 = vmatpush3.bf16.msra.mxu1 %v1123_v1  ;;  %999 = vmatprep.subr.bf16.mxu0 %v1124_v2 }
  0x3e   :  { %1021 = vmatprep.subr.bf16.mxu1 %v1125_v3 }
  0x40   :  { %1000 = vmatpush3.bf16.msra.mxu0 %v1126_v4 }
  0x41   :  { %1022 = vmatpush3.bf16.msra.mxu1 %v1127_v5  ;;  %1038 = vmatprep.subr.bf16.mxu0 %v1144_v12 }
  0x43   :  { %685 = vmatmul.mubr.bf16.vlgmr.msra.gmra.mrb[4].mxu0 %v864_v7 }
  0x44   :  { %725 = vmatmul.mubr.bf16.vlgmr.msra.gmra.mrb[4].mxu1 %v866_v10  ;;  %1039 = vmatpush3.bf16.msra.mxu0 %v1132_v13 }
  0x45   :  { %1040 = vmatprep.subr.bf16.mxu0 %v1144_v12  ;;  %1054 = vmatprep.mubr.msk.bf16.mxu0 %vm1145_vm0, %v1144_v12 }
  0x48   :  { %1041 = vmatpush3.bf16.msra.mxu0 %v1133_v14 }
  0x49   :  { %1042 = vmatprep.subr.bf16.mxu0 %v1144_v12 }
  0x4c   :  { %1043 = vmatpush3.bf16.msra.mxu0 %v1134_v15 }
  0x4d   :  { %1044 = vmatprep.subr.bf16.mxu0 %v1144_v12 }
  0x50   :  { %1045 = vmatpush3.bf16.msra.mxu0 %v1135_v16 }
  0x51   :  { %1046 = vmatprep.subr.bf16.mxu0 %v1144_v12 }
  0x54   :  { %1047 = vmatpush3.bf16.msra.mxu0 %v1136_v17 }
  0x55   :  { %1048 = vmatprep.subr.bf16.mxu0 %v1144_v12 }
  0x58   :  { %1049 = vmatpush3.bf16.msra.mxu0 %v1137_v18 }
  0x59   :  { %1050 = vmatprep.subr.bf16.mxu0 %v1144_v12 }
  0x5c   :  { %1051 = vmatpush3.bf16.msra.mxu0 %v1138_v19 }
  0x5d   :  { %1052 = vmatprep.subr.bf16.mxu0 %v1144_v12 }
  0x60   :  { %1053 = vmatpush3.bf16.msra.mxu0 %v1139_v20 }
  0xf6   :  { %v957_v21 = vpop.f32.mrb[0].mxu0 }
  0xf7   :  { %v979_v22 = vpop.f32.mrb[0].mxu1  ;;  %v958_v24 = vpop.f32.mrb[1].mxu0 }
  0xf8   :  { %v980_v25 = vpop.f32.mrb[1].mxu1  ;;  %v959_v26 = vadd.f32 %v958_v24, %v957_v21  ;;  %v960_v28 = vpop.f32.mrb[2].mxu0 }
  0xf9   :  { %v981_v27 = vadd.f32 %v980_v25, %v979_v22  ;;  %v982_v29 = vpop.f32.mrb[2].mxu1  ;;  %v961_v30 = vpop.f32.mrb[3].mxu0 }
  0xfa   :  { %v983_v31 = vpop.f32.mrb[3].mxu1  ;;  %v607_v32 = vadd.f32 %v959_v26, %v859_v23 }
  0xfc   :  { %v647_v33 = vadd.f32 %v981_v27, %v607_v32 }
 0x116   :  { %v1001_v34 = vpop.f32.mrb[4].mxu0 }
 0x117   :  { %v1023_v35 = vpop.f32.mrb[4].mxu1  ;;  %v1002_v36 = vpop.f32.mrb[5].mxu0 }
 0x118   :  { %v1024_v37 = vpop.f32.mrb[5].mxu1  ;;  %v1003_v38 = vadd.f32 %v1002_v36, %v1001_v34  ;;  %v1004_v40 = vpop.f32.mrb[6].mxu0 }
 0x119   :  { %v1025_v39 = vadd.f32 %v1024_v37, %v1023_v35  ;;  %v1026_v41 = vpop.f32.mrb[6].mxu1  ;;  %v1005_v42 = vpop.f32.mrb[7].mxu0 }
 0x11a   :  { %v1027_v43 = vpop.f32.mrb[7].mxu1  ;;  %v687_v44 = vadd.f32 %v1003_v38, %v647_v33 }
 0x11c   :  { %v727_v45 = vadd.f32 %v1025_v39, %v687_v44 }
 0x11e   :  { %v732_v46 = vmax.f32 %v727_v45, 0.0 }
 0x120   :  { %v733_v47 = vpack.c.bf16 %v732_v46, %v732_v46 }
 0x122   :  { %1055 = vmatmul.mubr.bf16.vlgmr.msra.gmra.mrb[8].mxu0 %v733_v47 }
 0x1f5   :  { %v839_v49 = vpop.f32.mrb[8].mxu0 }
 0x1f6   :  { %v840_v50 = vadd.f32 %v932_v48, %v839_v49  ;;  %v1056_v51 = vpop.f32.mrb[9].mxu0 }
 0x1f7   :  { %v842_v52 = vpop.f32.mrb[10].mxu0 }
 0x1f8   :  { %845 = vmax.xlane.f32.xlu0 %v840_v50  ;;  %v1057_v53 = vpop.f32.mrb[11].mxu0 }
 0x285   :  { %v846_v54 = vpop.xlane.xlu0 %845 }
 0x286   :  { %v847_v55 = vsub.f32 %v840_v50, %v846_v54 }
 0x288   :  { %v848_v56 = vmul.f32 1.442695, %v847_v55 }
 0x28a   :  { %1140 = vpow2.f32 %v848_v56 }
 0x294   :  { %v1141_v57 = vpop.eup %1140 }
 0x295   :  { %850 = vadd.xlane.f32.xlu0 %v1141_v57 }
 0x322   :  { %v851_v58 = vpop.xlane.xlu0 %850 }
 0x323   :  { %1142 = vrcp.f32 %v851_v58 }
 0x32d   :  { %v1143_v59 = vpop.eup %1142 }
 0x32e   :  { %v853_v60 = vmul.f32 %v1143_v59, %v1141_v57 }
 0x330   :  { %854 = vst [vmem:[%s1418_s5] sm:$0xff] %v853_v60 }

</bundles_post_ra>
